<compile_context>
chip_gen: v7x
topology: tpu7x:2x2x1
jax: 0.10.0
libtpu: 0.0.40
codegen_flags: <defaults>
</compile_context>

<pallas_src>
import functools

import jax
import jax.numpy as jnp
from jax import lax
from jax.experimental import pallas as pl
from jax.experimental.pallas import tpu as pltpu


_F32_MAX = float(jnp.finfo(jnp.float32).max)
_F32_MIN = float(jnp.finfo(jnp.float32).min)


# ----------------------------- reference (JAX) ------------------------------
# Faithful pure-JAX port of the PyTorch backward; also used as the fallback
# path for shapes where a Pallas launch is not worthwhile / not safe.

def _ref_backward(g, scaling_factor, epi, mul_small):
    out_features = jnp.float32(g.shape[-1])
    gf = g.astype(jnp.float32)
    avg_len = jnp.sqrt(jnp.sum(gf * gf, axis=1, keepdims=True) / out_features)
    raw = jnp.float32(scaling_factor) / avg_len
    raw = jnp.where(jnp.isnan(raw), jnp.float32(mul_small), raw)
    raw = jnp.clip(raw, _F32_MIN, _F32_MAX)
    mul_ok = jnp.where(raw < mul_small * 1000.0, raw, jnp.float32(mul_small))
    mul_me = jnp.where(avg_len <= epi, jnp.float32(mul_small), mul_ok)
    return (gf * mul_me).astype(g.dtype)


# --------------------------- tiling / budgeting ------------------------------

def _sublane_multiple(dtype) -> int:
    """Sublane packing multiple: 8 (f32), 16 (bf16), 32 (int8/fp8)."""
    return max(8, 32 // jnp.dtype(dtype).itemsize)


def _vmem_budgets():
    """(per-tile working-set budget bytes, scoped vmem_limit_bytes) per TPU gen."""
    try:
        cap = int(pltpu.get_tpu_info().vmem_capacity_bytes)
    except Exception:
        cap = 64 * 1024 * 1024            # be conservative (v7x-sized VMEM)
    if cap >= 128 * 1024 * 1024:          # v5e / v6e: 128 MiB physical VMEM
        return 24 * 1024 * 1024, 96 * 1024 * 1024
    # v7x (64 MiB physical) or unknown: keep plenty of headroom.
    return 12 * 1024 * 1024, 48 * 1024 * 1024


def _working_bytes_per_row(features: int, itemsize: int) -> int:
    # 2x double-buffered input + 2x double-buffered output tiles (g.dtype)
    # plus ~2 f32-sized temporaries (gf and the scaled product).
    return features * (4 * itemsize + 2 * 4)


def _pick_batch_tile(batch: int, features: int, dtype, tile_budget: int) -> int:
    sub = _sublane_multiple(dtype)
    itemsize = jnp.dtype(dtype).itemsize
    if batch <= sub:
        return batch                      # full-dim block: always legal
    rows = tile_budget // max(_working_bytes_per_row(features, itemsize), 1)
    rows = max(sub, (rows // sub) * sub)
    if rows >= batch:
        # Split into >=2 sublane-aligned steps so dimension_semantics
        # ("parallel",) can shard the grid across v7x's two TensorCores.
        # Costs one extra ~0.35us step on single-TC v5e/v6e: negligible.
        half_rows = (batch + 1) // 2
        half = ((half_rows + sub - 1) // sub) * sub
        rows = half if half < batch else batch
    return rows


# ------------------------------ backward kernel ------------------------------

def _backward_pallas(g: jax.Array, scaling_factor: float, epi: float,
                     mul_small: float, *, donate_cotangent: bool = False):
    batch, features = g.shape
    itemsize = jnp.dtype(g.dtype).itemsize
    tile_budget, vmem_limit = _vmem_budgets()
    sub = _sublane_multiple(g.dtype)

    # Lane-density / VMEM guards: non-128-multiple feature dims lower to masked
    # partial stores and tiny launches lose to fused XLA; rows too wide for the
    # budget would need feature-axis tiling.  Fall back to the JAX reference.
    # TODO(synk): add feature-axis tiling (2-pass sum-of-squares accumulation)
    # instead of falling back for extremely wide rows.
    lane_dense = (features >= 128) and (features % 128 == 0)
    min_tile_fits = _working_bytes_per_row(features, itemsize) * sub <= vmem_limit
    if not (lane_dense and min_tile_fits):
        return _ref_backward(g, scaling_factor, epi, mul_small)

    tb = _pick_batch_tile(batch, features, g.dtype, tile_budget)
    grid = (pl.cdiv(batch, tb),)

    # Trace-time constant folding of the thresholds (non-trainable buffers).
    sf = float(scaling_factor)
    ms = float(mul_small)
    too_big_thresh = ms * 1000.0
    inv_f = 1.0 / float(features)
    epi_f = float(epi)

    def kernel(g_ref, o_ref):
        gv = g_ref[...]                                   # load tile exactly once
        gf = gv.astype(jnp.float32)
        avg = jnp.sum(gf * gf, axis=1, keepdims=True) * inv_f     # [TB, 1]
        avg_len = lax.sqrt(avg)                                    # EUP
        raw = sf * lax.rsqrt(avg)                                  # EUP rsqrt
        # Explicit equivalent of torch .nan_to_num_(ms): NaN -> ms, +/-inf -> clamp.
        raw = jnp.where(jnp.isnan(raw), ms, raw)
        raw = jnp.clip(raw, _F32_MIN, _F32_MAX)
        mul_ok = jnp.where(raw < too_big_thresh, raw, ms)
        mul_me = jnp.where(avg_len <= epi_f, ms, mul_ok)           # [TB, 1]
        # TODO(synk): PyTorch casts the per-row scale to g.dtype *before* the
        # multiply; doing the multiply in f32 differs by <=1 ulp for bf16 grads.
        o_ref[...] = (gf * mul_me).astype(o_ref.dtype)

    cost = pl.CostEstimate(
        flops=3 * batch * features,          # square + reduce-add + scale mul
        transcendentals=2 * batch,           # sqrt + rsqrt per row
        bytes_accessed=2 * batch * features * itemsize,
    )
    call_kwargs = {}
    if donate_cotangent:
        call_kwargs["input_output_aliases"] = {0: 0}

    return pl.pallas_call(
        kernel,
        out_shape=jax.ShapeDtypeStruct(g.shape, g.dtype),
        grid=grid,
        in_specs=[pl.BlockSpec((tb, features), lambda i: (i, 0))],
        out_specs=pl.BlockSpec((tb, features), lambda i: (i, 0)),
        compiler_params=pltpu.CompilerParams(
            dimension_semantics=("parallel",),
            vmem_limit_bytes=vmem_limit,
        ),
        cost_estimate=cost,
        **call_kwargs,
    )(g)


# ------------------------- module-equivalent wrapper -------------------------

@functools.partial(jax.custom_vjp, nondiff_argnums=(1, 2, 3))
def gradient_modification_v2(x, scaling_factor=1.0, epi=1e-5,
                             mul_me_when_g_too_small=1000.0):
    if x.ndim != 2:
        raise Exception(
            "GradientModification only accept rank-2 tensor. "
            "The shape should be [batch, something]"
        )
    # Forward is an identity; no kernel / no HBM copy needed.
    return x


def _gm_fwd(x, scaling_factor, epi, mul_me_when_g_too_small):
    return gradient_modification_v2(
        x, scaling_factor, epi, mul_me_when_g_too_small), None


def _gm_bwd(scaling_factor, epi, mul_me_when_g_too_small, _residuals, g_in_b_o):
    g_out = _backward_pallas(g_in_b_o, scaling_factor, epi,
                             mul_me_when_g_too_small)
    return (g_out,)   # config scalars are static (requires_grad=False in torch)


gradient_modification_v2.defvjp(_gm_fwd, _gm_bwd)


class GradientModificationV2:
    """JAX/Pallas equivalent of GradientModification_v2.

    Config scalars are plain Python floats (static / trace-time constants),
    mirroring the non-trainable buffers of the PyTorch module.
    """

    def __init__(self, scaling_factor: float = 1.0, epi: float = 1e-5,
                 mul_me_when_g_too_small: float = 1000.0):
        self.scaling_factor = float(scaling_factor)
        self.epi = float(epi)
        self.mul_me_when_g_too_small = float(mul_me_when_g_too_small)

    def set_scaling_factor(self, scaling_factor: float) -> None:
        self.scaling_factor = float(scaling_factor)

    def scale_scaling_factor(self, by: float) -> None:
        self.scaling_factor *= float(by)

    def set_epi(self, epi: float) -> None:
        self.epi = float(epi)

    def set_mul_me_when_g_too_small(self, mul_me_when_g_too_small: float) -> None:
        self.mul_me_when_g_too_small = float(mul_me_when_g_too_small)

    def __call__(self, x):
        if x.ndim != 2:
            raise Exception(
                "GradientModification only accept rank-2 tensor. "
                "The shape should be [batch, something]"
            )
        return gradient_modification_v2(
            x, self.scaling_factor, self.epi, self.mul_me_when_g_too_small
        )


# ----------------------------------- main ------------------------------------

if __name__ == "__main__":
    key = jax.random.PRNGKey(0)
    kx, kg, kn = jax.random.split(key, 3)

    mod = GradientModificationV2(scaling_factor=1.0, epi=1e-5,
                                 mul_me_when_g_too_small=1000.0)

    # --- lane-dense f32 case: exercises the Pallas kernel (multi-step grid) ---
    batch, hidden = 16, 128
    x = jax.random.normal(kx, (batch, hidden), jnp.float32)

    y = mod(x)
    jax.block_until_ready(y)
    assert y.shape == x.shape and y.dtype == x.dtype
    assert bool(jnp.allclose(y, x))                      # forward is identity

    g_in = jax.random.normal(kg, (batch, hidden), jnp.float32) * 0.01
    g_in = g_in.at[0].set(g_in[0] * 1e-9)                # "too small" branch
    g_in = g_in.at[1].set(0.0)                           # exactly-zero row (inf/NaN path)

    _, vjp_fn = jax.vjp(lambda t: mod(t), x)
    (g_out,) = vjp_fn(g_in)
    jax.block_until_ready(g_out)

    g_ref = _ref_backward(g_in, mod.scaling_factor, mod.epi,
                          mod.mul_me_when_g_too_small)
    assert bool(jnp.allclose(g_out, g_ref, rtol=1e-5, atol=1e-6)), "f32 backward mismatch"

    # --- bf16 case: exercises dtype-aware sublane rounding in the tiler ---
    xb = x.astype(jnp.bfloat16)
    gb = g_in.astype(jnp.bfloat16)
    _, vjp_fn_b = jax.vjp(lambda t: mod(t), xb)
    (gb_out,) = vjp_fn_b(gb)
    jax.block_until_ready(gb_out)
    gb_ref = _ref_backward(gb, mod.scaling_factor, mod.epi,
                           mod.mul_me_when_g_too_small)
    assert gb_out.dtype == jnp.bfloat16
    assert bool(jnp.allclose(gb_out.astype(jnp.float32),
                             gb_ref.astype(jnp.float32),
                             rtol=2e-2, atol=2e-2)), "bf16 backward mismatch"

    # --- narrow-feature case (features=32): exercises the fused-XLA fallback ---
    xn = jax.random.normal(kn, (8, 32), jnp.float32)
    gn = xn * 0.1
    _, vjp_fn_n = jax.vjp(lambda t: mod(t), xn)
    (gn_out,) = vjp_fn_n(gn)
    jax.block_until_ready(gn_out)
    assert gn_out.shape == xn.shape and gn_out.dtype == xn.dtype
    assert bool(jnp.all(jnp.isfinite(gn_out)))

    print("KERNEL_OK")
</pallas_src>

<mosaic_0001>
module attributes {stable_mosaic.version = 11 : i64} {
  func.func @kernel(%arg0: i32, %arg1: memref<8x128xf32, #tpu.memory_space<vmem>>, %arg2: memref<8x128xf32, #tpu.memory_space<vmem>>) attributes {dimension_semantics = [#tpu.dimension_semantics<parallel>], iteration_bounds = array<i64: 2>, scalar_prefetch = 0 : i64, scratch_operands = 0 : i64, tpu.core_type = #tpu.core_type<tc>, window_params = [{transform_indices = @transform_0, window_bounds = array<i64: 8, 128>}, {transform_indices = @transform_1, window_bounds = array<i64: 8, 128>}]} {
    %c0 = arith.constant 0 : index
    %c0_0 = arith.constant 0 : index
    %0 = vector.load %arg1[%c0, %c0_0] : memref<8x128xf32, #tpu.memory_space<vmem>>, vector<8x128xf32>
    %1 = arith.mulf %0, %0 : vector<8x128xf32>
    %cst = arith.constant dense<0.000000e+00> : vector<8xf32>
    %2 = vector.multi_reduction <add>, %1, %cst [1] : vector<8x128xf32> to vector<8xf32>
    %3 = vector.shape_cast %2 : vector<8xf32> to vector<8x1xf32>
    %cst_1 = arith.constant 7.812500e-03 : f32
    %4 = vector.broadcast %cst_1 : f32 to vector<8x1xf32>
    %5 = arith.mulf %3, %4 : vector<8x1xf32>
    %6 = math.sqrt %5 : vector<8x1xf32>
    %7 = math.rsqrt %5 : vector<8x1xf32>
    %cst_2 = arith.constant 1.000000e+00 : f32
    %8 = vector.broadcast %cst_2 : f32 to vector<8x1xf32>
    %9 = arith.mulf %8, %7 : vector<8x1xf32>
    %10 = arith.cmpf one, %9, %9 : vector<8x1xf32>
    %cst_3 = arith.constant 1.000000e+03 : f32
    %11 = vector.broadcast %cst_3 : f32 to vector<8x1xf32>
    %12 = arith.select %10, %11, %9 : vector<8x1xi1>, vector<8x1xf32>
    %cst_4 = arith.constant -3.40282347E+38 : f32
    %cst_5 = arith.constant 3.40282347E+38 : f32
    %13 = vector.broadcast %cst_4 : f32 to vector<8x1xf32>
    %14 = arith.maximumf %13, %12 : vector<8x1xf32>
    %15 = vector.broadcast %cst_5 : f32 to vector<8x1xf32>
    %16 = arith.minimumf %15, %14 : vector<8x1xf32>
    %cst_6 = arith.constant 1.000000e+06 : f32
    %17 = vector.broadcast %cst_6 : f32 to vector<8x1xf32>
    %18 = arith.cmpf olt, %16, %17 : vector<8x1xf32>
    %cst_7 = arith.constant 1.000000e+03 : f32
    %19 = vector.broadcast %cst_7 : f32 to vector<8x1xf32>
    %20 = arith.select %18, %16, %19 : vector<8x1xi1>, vector<8x1xf32>
    %cst_8 = arith.constant 9.99999974E-6 : f32
    %21 = vector.broadcast %cst_8 : f32 to vector<8x1xf32>
    %22 = arith.cmpf ole, %6, %21 : vector<8x1xf32>
    %cst_9 = arith.constant 1.000000e+03 : f32
    %23 = vector.broadcast %cst_9 : f32 to vector<8x1xf32>
    %24 = arith.select %22, %23, %20 : vector<8x1xi1>, vector<8x1xf32>
    %25 = vector.broadcast %24 : vector<8x1xf32> to vector<8x128xf32>
    %26 = arith.mulf %0, %25 : vector<8x128xf32>
    %c0_10 = arith.constant 0 : index
    %c0_11 = arith.constant 0 : index
    %27 = vector.load %arg2[%c0_10, %c0_11] : memref<8x128xf32, #tpu.memory_space<vmem>>, vector<8x128xf32>
    tpu.vector_store %arg2[%c0_10, %c0_11], %26 {strides = array<i32>} : memref<8x128xf32, #tpu.memory_space<vmem>>, vector<8x128xf32>,
    return
  }
  func.func @transform_0(%arg0: i32) -> (i32, i32) {
    %c0_i32 = arith.constant 0 : i32
    %c0_i32_0 = arith.constant 0 : i32
    return %arg0, %c0_i32 : i32, i32
  }
  func.func @transform_1(%arg0: i32) -> (i32, i32) {
    %c0_i32 = arith.constant 0 : i32
    %c0_i32_0 = arith.constant 0 : i32
    return %arg0, %c0_i32 : i32, i32
  }
}

</mosaic_0001>

<bundles_post_ra>
// kernel: tpu_custom_call.1
= control target key start
LH: loop header
LB: loop body
LE: loop exit
PB: predicated region body
PF: predicated region fallthrough
CT: control target
= control target key end

     0   :  { %6 = vsyncpa [#allocation3], 0  ;;  %s571_s0 = inlined_call_operand.hbm [shape: f32[16,128], index: 0, kind: input, shape index: {}]   ;;  %s572_s1 = inlined_call_operand.hbm [shape: f32[16,128], index: 1, kind: output, shape index: {}]  }
   0x1   :  { %8 = vsyncpa [#allocation3 + $0x1], 0 }
   0x2   :  { %9 = vsyncpa [#allocation4], 0 }
   0x3   :  { %11 = vsyncpa [#allocation4 + $0x1], 0  ;;  %s410_s6 = smov 0   ;;  %s412_s7 = smov 0  }
   0x4   :  { %s414_s8 = smov 0   ;;  %s416_s9 = smov 0  }
   0x5 LB: > { %s431_s10 = sadd.s32 4294967295, %s396_s9   ;;  %s239_s11 = sadd.s32 4294967294, %s396_s9   ;;  %s396_s9 = sphi %s416_s9, %s587_s9   ;;  %s392_s8 = sphi %s414_s8, %s586_s8   ;;  %s388_s7 = sphi %s412_s7, %s585_s7   ;;  %s384_s6 = sphi %s410_s6, %s584_s6  }
   0x6   : > { %s435_s12 = sadd.s32 1, %s396_s9   ;;  %s24_s13 = sadd.s32 1, %s392_s8 }
   0x7   : > { %s21_s14 = ssub.s32 %s396_s9, %s435_s12  ;;  %p31_p0 = scmp.ne.s32.totalorder %s392_s8, %s388_s7 }
   0x8   : > { %p22_p1 = scmp.eq.s32.totalorder %s21_s14, 0  ;;  %p32_p2 = scmp.eq.s32.totalorder %s396_s9, 0 }
   0x9   : > { %p37_p3 = scmp.ne.s32.totalorder %s388_s7, %s384_s6  ;;  %p38_p4 = scmp.eq.s32.totalorder %s431_s10, 0 }
   0xa   : > { %s447_s15 = scalar_select %p22_p1, %s392_s8, %s24_s13  }
   0xb   : > { %p449_p5 = por %p32_p2, %p31_p0  ;;  %p453_p6 = por %p38_p4, %p37_p3 }
   0xc   : > { %p61_p7 = scmp.eq.s32.totalorder %s431_s10, 1  ;;  %p67_p8 = scmp.eq.s32.totalorder %s239_s11, 1 }
   0xd   : > { %p264_p10 = scmp.lt.s32.totalorder %s396_s9, 2  ;;  %s87_s20 = sand.u32 1, %s392_s8  }
   0xe   : > { %p460_p11 = por %p61_p7, %p31_p0  ;;  %p464_p12 = por %p67_p8, %p37_p3 }
   0xf   : > { %s243_s21 = sshll.u32 %s396_s9, 7  ;;  %s242_s22 = sshll.u32 %s87_s20, 3 }
  0x10   : > { %s576_s18 = scalar_select %p460_p11, 1, 0 }
  0x11   : > { %s577_s19 = scalar_select %p464_p12, 1, 0 }
  0x12   : > { %s473_s25 = scalar_lea.hbm %s571_s0, %s243_s21  ;;  %s91_s26 = scalar_lea.vmem [#allocation2], %s242_s22 }
  0x13   : > { %s98_s27 = sshll.u32 %s91_s26, 4  ;;  %p477_p13 = pnand %p264_p10, %p449_p5  ;;  %s481_s27 = int_to_ptr.vmem [resolvable:$true] %s98_s27 }
  0x14   : > { %s88_s29 = scalar_lea.sflag [#allocation3], %s87_s20  ;;  %s300_s30 = scalar_lea.hbm %s473_s25, 128 }
  0x15   : > { %p301_p2 = scmp.ne.s32.totalorder %s473_s25, %s300_s30  ;;  %p302_p3 = pneg %p477_p13 }
  0x16   : > { %s305_s4 = scalar_lea.hbm %s571_s0, 256  ;;  %p306_p5 = scmp.lt.u32.totalorder %s473_s25, %s571_s0 }
  0x17   : > { %p303_p4 = pnand %p302_p3, %p301_p2  ;;  %p307_p8 = scmp.lt.u32.totalorder %s305_s4, %s300_s30 }
  0x18   : > { %p309_p9 = scmp.lt.u32.totalorder %s300_s30, %s473_s25 }
  0x19   : > { %p304_p7 = pneg %p303_p4  ;;  %p308_p10 = por %p307_p8, %p306_p5 }
  0x1b   : > { %p310_p0 = por %p309_p9, %p308_p10 }
  0x1d   : > { %p311_p1 = pnand %p310_p0, %p304_p7 }
  0x1f   : > { %314 = shalt.err (!%p311_p1)
}
  0x20   : > { %s315_s13 = scalar_lea.vmem %s481_s27, 128  ;;  %s398_s14 = smov [#allocation2]  }
  0x21   : > { %p316_p2 = scmp.ne.s32.totalorder %s481_s27, %s315_s13  ;;  %s320_s16 = sshll.u32 %s398_s14, 4  ;;  %s321_s16 = int_to_ptr.vmem [resolvable:$false] %s320_s16 }
  0x22   : > { %s322_s20 = scalar_lea.vmem %s321_s16, 256  ;;  %p323_p11 = scmp.lt.s32.totalorder %s481_s27, %s321_s16 }
  0x23   : > { %p318_p4 = pnand %p316_p2, %p302_p3  ;;  %p324_p5 = scmp.lt.s32.totalorder %s322_s20, %s315_s13 }
  0x25   : > { %p319_p12 = pneg %p318_p4  ;;  %p325_p8 = por %p324_p5, %p323_p11 }
  0x27   : > { %p326_p9 = pnand %p325_p8, %p319_p12 }
  0x29   : > { %329 = shalt.err (!%p326_p9)
}
  0x2a   : > { %259 = dma.hbm_to_vmem [thread:$0]  (!%p477_p13), %s473_s25, 128, %s481_s27, %s88_s29  }
  0x2b   : > { %p579_p0 = scmp.lt.s32.totalorder %s396_s9, 3  ;;  %p580_p1 = scmp.ge.s32.totalorder %s396_s9, 1 }
  0x2d   : > { %p104_p3 = pnand %p580_p1, %p579_p0 }
  0x2e   : > { %s515_s21 = sand.u32 (!%p104_p3), 1, %s388_s7  }
  0x2f   : > { %107 = sbr.rel (%p104_p3) target bundleno = 236 (0xec), region = 24  ;;  %s245_s22 = sshll.u32 (!%p104_p3), %s515_s21, 3 }
  0x30   : > { %s110_s23 = scalar_lea.sflag (!%p104_p3), [#allocation3], %s515_s21  ;;  %s113_s24 = scalar_lea.vmem (!%p104_p3), [#allocation2], %s245_s22 }
  0x36   : > { %375 = dma.done.wait (%p453_p6), %s110_s23, 128  }
  0x37   : > { %377 = vsyncadd (%p453_p6), %s110_s23, 4294967168  ;;  %v132_v0 = vld [vmem:[%s113_s24] sm:$0xff]  ;;  %s249_s17 = sshll.u32 %s431_s10, 7  ;;  %s131_s25 = scalar_lea.vmem [#allocation5], %s245_s22 }
  0x38   : > { %v133_v1 = vmul.f32 %v132_v0, %v132_v0  ;;  %s169_s26 = sshll.u32 %s131_s25, 4  ;;  %s527_s29 = scalar_lea.hbm %s572_s1, %s249_s17  ;;  %s529_s26 = int_to_ptr.vmem [resolvable:$true] %s169_s26 }
  0x39   : > { %s156_s30 = scalar_lea.sflag [#allocation4], %s515_s21  ;;  %s330_s2 = scalar_lea.vmem %s529_s26, 128 }
  0x3a   : > { %134 = vadd.xlane.f32.xlu0 %v133_v1  ;;  %p331_p6 = scmp.ne.s32.totalorder %s529_s26, %s330_s2  ;;  %p581_p11 = scmp.ne.s32.totalorder %s576_s18, 0 }
  0x3b   : > { %s399_s10 = smov [#allocation5]  }
  0x3c   : > { %p332_p12 = pnand %p331_p6, %p581_p11  ;;  %s334_s3 = sshll.u32 %s399_s10, 4  ;;  %s335_s3 = int_to_ptr.vmem [resolvable:$false] %s334_s3 }
  0x3d   : > { %s336_s4 = scalar_lea.vmem %s335_s3, 256  ;;  %p337_p7 = scmp.lt.s32.totalorder %s529_s26, %s335_s3 }
  0x3e   : > { %p333_p13 = pneg %p332_p12  ;;  %p338_p10 = scmp.lt.s32.totalorder %s336_s4, %s330_s2 }
  0x40   : > { %p339_p2 = por %p338_p10, %p337_p7 }
  0x42   : > { %p340_p4 = pnand %p339_p2, %p333_p13 }
  0xc7   : > { %v135_v2 = vpop.xlane.xlu0 %134 }
  0xc8   : > { %v136_v3 = vmul.f32 0.0078125, %v135_v2 }
  0xca   : > { %298 = vrsqrt.f32 %v136_v3  ;;  %vm139_vm1 = vcmp.eq.f32.partialorder %v136_v3, inf  ;;  %v142_v6 = vand.u32 2147483648, %v136_v3  ;;  %vm141_vm2 = vcmp.eq.f32.partialorder %v136_v3, 0.0 }
  0xd4   : > { %v299_v4 = vpop.eup %298 }
  0xd5   : > { %v138_v5 = vmul.f32 %v299_v4, %v136_v3  ;;  %vm145_vm0 = vcmp.ne.f32.partialorder %v299_v4, %v299_v4 }
  0xd6   : > { %v146_v7 = vsel %vm145_vm0, 1000.0, %v299_v4 }
  0xd7   : > { %v140_v8 = vsel %vm139_vm1, %v136_v3, %v138_v5  ;;  %v247_v9 = vclamps-f32 %v146_v7, 3.4028235e+38 }
  0xd8   : > { %v143_v10 = vsel %vm141_vm2, %v142_v6, %v140_v8 }
  0xd9   : > { %vm149_vm3 = vcmp.lt.f32.partialorder %v247_v9, 1000000.0  ;;  %vm151_vm4 = vcmp.le.f32.partialorder %v143_v10, 1e-05 }
  0xda   : > { %v150_v11 = vsel %vm149_vm3, %v247_v9, 1000.0 }
  0xdb   : > { %v152_v12 = vsel %vm151_vm4, 1000.0, %v150_v11 }
  0xdc   : > { %v153_v13 = vmul.f32 %v152_v12, %v132_v0 }
  0xde   : > { %154 = vst [vmem:[%s131_s25] sm:$0xff] %v153_v13 }
  0xdf   : > { %343 = shalt.err (!%p340_p4)
}
  0xe0   : > { %s344_s5 = scalar_lea.hbm %s527_s29, 128  ;;  %s348_s14 = scalar_lea.hbm %s572_s1, 256 }
  0xe1   : > { %p345_p5 = scmp.ne.s32.totalorder %s527_s29, %s344_s5  ;;  %p349_p0 = scmp.lt.u32.totalorder %s527_s29, %s572_s1 }
  0xe2   : > { %p350_p1 = scmp.lt.u32.totalorder %s348_s14, %s344_s5  ;;  %p352_p6 = scmp.lt.u32.totalorder %s344_s5, %s527_s29 }
  0xe3   : > { %p346_p8 = pnand %p345_p5, %p581_p11 }
  0xe4   : > { %p351_p3 = por %p350_p1, %p349_p0 }
  0xe5   : > { %p347_p9 = pneg %p346_p8 }
  0xe6   : > { %p353_p12 = por %p352_p6, %p351_p3 }
  0xe8   : > { %p354_p13 = pnand %p353_p12, %p347_p9 }
  0xea   : > { %357 = shalt.err (!%p354_p13)
}
  0xeb   : > { %254 = dma.vmem_to_hbm [thread:$0]  (%p581_p11), %s529_s26, 128, %s527_s29, %s156_s30  }
  0xec PF: > { %s181_s21 = sand.u32 1, %s384_s6   ;;  %p582_p7 = scmp.ne.s32.totalorder %s577_s19, 0 }
  0xed   : > { %p583_p10 = scmp.ge.s32.totalorder %s396_s9, 2  ;;  %s182_s22 = scalar_lea.sflag [#allocation4], %s181_s21 }
  0xef   : > { %p261_p2 = pnand %p583_p10, %p582_p7 }
  0xf1   : > { %379 = dma.done.wait (!%p261_p2), %s182_s22, 128  }
  0xf2   : > { %381 = vsyncadd (!%p261_p2), %s182_s22, 4294967168  ;;  %p14_p4 = scmp.ge.s32.totalorder %s435_s12, 4   ;;  %s584_s6 = smov %s388_s7 }
  0xf3   : > { %s585_s7 = smov %s392_s8  ;;  %s586_s8 = smov %s447_s15 }
  0xf4   : > { %s587_s9 = smov %s435_s12  ;;  %16 = sbr.rel (!%p14_p4) target bundleno = 5 (0x5), region = 69 }
  0xfb   :  { %187 = vsyncpa [#allocation3], 1 }
  0xfc   :  { %189 = vsyncpa [#allocation3 + $0x1], 1 }
  0xfd   :  { %190 = vsyncpa [#allocation4], 1 }
  0xfe   :  { %192 = vsyncpa [#allocation4 + $0x1], 1 }

</bundles_post_ra>
